<compile_context>
chip_gen: v5e
topology: v5e:2x2
jax: 0.10.0
libtpu: 0.0.40
codegen_flags: <defaults>
</compile_context>

<pallas_src>
import jax
import jax.numpy as jnp
from jax.experimental import pallas as pl
from jax.experimental.pallas import tpu as pltpu


_MIN_PALLAS_BATCH = 1024      # below this, XLA's fused path wins (feedback 4)
_MAX_BATCH_TILE = 32768       # lane-dense tiles; ~6 MiB VMEM incl. padding


def _fc_square_kernel(xT_ref, w_ref, b_ref, oT_ref):
    # xT: (IN, TB)  feature-major input tile (batch on the 128-lane axis)
    # w : (OUT, IN) nn.Linear weight (as stored by PyTorch)
    # b : (OUT, 1)  bias column
    # oT: (OUT, TB) feature-major output tile
    xT = xT_ref[...].astype(jnp.float32)
    w = w_ref[...].astype(jnp.float32)
    b = b_ref[...].astype(jnp.float32)

    in_features = w.shape[1]          # static (=2) -> unrolled VPU contraction
    y = w[:, 0:1] * xT[0:1, :]        # (OUT,1)*(1,TB) -> (OUT,TB)
    for k in range(1, in_features):
        y = y + w[:, k:k + 1] * xT[k:k + 1, :]
    y = y + b                         # bias broadcast over lanes

    oT_ref[...] = (y * y).astype(oT_ref.dtype)   # torch.mul(x, x)


def _pick_batch_tile(B):
    # Largest power-of-two lane tile <= _MAX_BATCH_TILE that divides B while
    # leaving at least 2 grid steps (so v7x's two TensorCores both get work).
    tb = 128
    t = 256
    while t <= _MAX_BATCH_TILE and 2 * t <= B:
        if B % t == 0:
            tb = t
        t *= 2
    return tb


def fc_square_feature_major(xT, weight, bias):
    """square(Linear(xT)) with feature-major activations.

    xT: (IN, B), weight: (OUT, IN), bias: (OUT,).  Returns (OUT, B).
    Keep activations in this layout end-to-end to avoid HBM transpose passes.
    """
    in_features, B = xT.shape
    out_features = weight.shape[0]

    if B < _MIN_PALLAS_BATCH or B % 128 != 0:
        # Tiny / awkward batches: plain JAX (fused elementwise) is faster than
        # a custom call and handles any shape.
        y = (weight.astype(jnp.float32) @ xT.astype(jnp.float32)
             + bias.astype(jnp.float32)[:, None])
        return (y * y).astype(xT.dtype)

    tb = _pick_batch_tile(B)
    grid = (B // tb,)

    return pl.pallas_call(
        _fc_square_kernel,
        out_shape=jax.ShapeDtypeStruct((out_features, B), xT.dtype),
        grid=grid,
        in_specs=[
            pl.BlockSpec((in_features, tb), lambda i: (0, i)),            # xT
            pl.BlockSpec((out_features, in_features), lambda i: (0, 0)),  # W
            pl.BlockSpec((out_features, 1), lambda i: (0, 0)),            # b
        ],
        out_specs=pl.BlockSpec((out_features, tb), lambda i: (0, i)),
        compiler_params=pltpu.CompilerParams(
            dimension_semantics=("parallel",),
            vmem_limit_bytes=32 * 1024 * 1024),
    )(xT, weight, bias.reshape(out_features, 1))


def test_mul_forward(x, weight, bias):
    """TestMul.forward for batch-major x: (B, IN) -> (B, OUT).

    Small B falls back to plain JAX (feedback 4).  Large B re-lays out once to
    feature-major around the kernel; prefer calling fc_square_feature_major
    directly to avoid even those two passes.
    """
    B = x.shape[0]
    if B < _MIN_PALLAS_BATCH or B % 128 != 0:
        y = (x.astype(jnp.float32) @ weight.astype(jnp.float32).T
             + bias.astype(jnp.float32))
        return (y * y).astype(x.dtype)
    return fc_square_feature_major(x.T, weight, bias).T


if __name__ == "__main__":
    key = jax.random.PRNGKey(0)
    k_xs, k_xl, k_w, k_b = jax.random.split(key, 4)

    IN, OUT = 2, 4                       # shapes implied by nn.Linear(2, 4)
    bound = 1.0 / jnp.sqrt(jnp.float32(IN))
    weight = jax.random.uniform(k_w, (OUT, IN), jnp.float32, -bound, bound)
    bias = jax.random.uniform(k_b, (OUT,), jnp.float32, -bound, bound)

    # 1) Shipped small shape (B=8): plain-JAX fallback path.
    x_small = jax.random.normal(k_xs, (8, IN), dtype=jnp.float32)
    out_small = test_mul_forward(x_small, weight, bias)

    # 2) Pallas path: feature-major activations, 2 x 2048 lane tiles so the
    #    "parallel" grid has >= 2 steps (both v7x TensorCores busy).
    B = 4096
    xT = jax.random.normal(k_xl, (IN, B), dtype=jnp.float32)
    outT = fc_square_feature_major(xT, weight, bias)

    jax.block_until_ready((out_small, outT))

    # Sanity checks against plain-JAX references.
    ref_small = jnp.square(x_small @ weight.T + bias)
    ref_T = jnp.square(weight @ xT + bias[:, None])
    assert out_small.shape == (8, OUT)
    assert outT.shape == (OUT, B)
    assert jnp.allclose(out_small, ref_small, atol=1e-5, rtol=1e-5)
    assert jnp.allclose(outT, ref_T, atol=1e-5, rtol=1e-5)

    # TODO(synk): quantize()/quantize_forward()/freeze()/quantize_inference()
    # depend on QLinear/QMul which are not defined in the spec; only the fp32
    # forward pass is implemented here.

    print("KERNEL_OK")
</pallas_src>

<mosaic_0001>
module attributes {stable_mosaic.version = 11 : i64} {
  func.func @_fc_square_kernel(%arg0: i32, %arg1: memref<2x2048xf32, #tpu.memory_space<vmem>>, %arg2: memref<4x2xf32, #tpu.memory_space<vmem>>, %arg3: memref<4x1xf32, #tpu.memory_space<vmem>>, %arg4: memref<4x2048xf32, #tpu.memory_space<vmem>>) attributes {dimension_semantics = [#tpu.dimension_semantics<parallel>], iteration_bounds = array<i64: 2>, scalar_prefetch = 0 : i64, scratch_operands = 0 : i64, tpu.core_type = #tpu.core_type<tc>, window_params = [{transform_indices = @transform_0, window_bounds = array<i64: 2, 2048>}, {pipeline_mode = #tpu.pipeline_mode<synchronous>, transform_indices = @transform_1, window_bounds = array<i64: 4, 2>}, {pipeline_mode = #tpu.pipeline_mode<synchronous>, transform_indices = @transform_2, window_bounds = array<i64: 4, 1>}, {transform_indices = @transform_3, window_bounds = array<i64: 4, 2048>}]} {
    %c0 = arith.constant 0 : index
    %c0_0 = arith.constant 0 : index
    %0 = vector.load %arg1[%c0, %c0_0] : memref<2x2048xf32, #tpu.memory_space<vmem>>, vector<2x2048xf32>
    %c0_1 = arith.constant 0 : index
    %c0_2 = arith.constant 0 : index
    %1 = vector.load %arg2[%c0_1, %c0_2] : memref<4x2xf32, #tpu.memory_space<vmem>>, vector<4x2xf32>
    %c0_3 = arith.constant 0 : index
    %c0_4 = arith.constant 0 : index
    %2 = vector.load %arg3[%c0_3, %c0_4] : memref<4x1xf32, #tpu.memory_space<vmem>>, vector<4x1xf32>
    %3 = vector.extract_strided_slice %1 {offsets = [0, 0], sizes = [4, 1], strides = [1, 1]} : vector<4x2xf32> to vector<4x1xf32>
    %4 = vector.extract_strided_slice %0 {offsets = [0, 0], sizes = [1, 2048], strides = [1, 1]} : vector<2x2048xf32> to vector<1x2048xf32>
    %5 = vector.broadcast %3 : vector<4x1xf32> to vector<4x2048xf32>
    %6 = vector.broadcast %4 : vector<1x2048xf32> to vector<4x2048xf32>
    %7 = arith.mulf %5, %6 : vector<4x2048xf32>
    %8 = vector.extract_strided_slice %1 {offsets = [0, 1], sizes = [4, 1], strides = [1, 1]} : vector<4x2xf32> to vector<4x1xf32>
    %9 = vector.extract_strided_slice %0 {offsets = [1, 0], sizes = [1, 2048], strides = [1, 1]} : vector<2x2048xf32> to vector<1x2048xf32>
    %10 = vector.broadcast %8 : vector<4x1xf32> to vector<4x2048xf32>
    %11 = vector.broadcast %9 : vector<1x2048xf32> to vector<4x2048xf32>
    %12 = arith.mulf %10, %11 : vector<4x2048xf32>
    %13 = arith.addf %7, %12 : vector<4x2048xf32>
    %14 = vector.broadcast %2 : vector<4x1xf32> to vector<4x2048xf32>
    %15 = arith.addf %13, %14 : vector<4x2048xf32>
    %16 = arith.mulf %15, %15 : vector<4x2048xf32>
    %c0_5 = arith.constant 0 : index
    %c0_6 = arith.constant 0 : index
    %17 = vector.load %arg4[%c0_5, %c0_6] : memref<4x2048xf32, #tpu.memory_space<vmem>>, vector<4x2048xf32>
    tpu.vector_store %arg4[%c0_5, %c0_6], %16 {strides = array<i32>} : memref<4x2048xf32, #tpu.memory_space<vmem>>, vector<4x2048xf32>,
    return
  }
  func.func @transform_0(%arg0: i32) -> (i32, i32) {
    %c0_i32 = arith.constant 0 : i32
    %c0_i32_0 = arith.constant 0 : i32
    return %c0_i32, %arg0 : i32, i32
  }
  func.func @transform_1(%arg0: i32) -> (i32, i32) {
    %c0_i32 = arith.constant 0 : i32
    %c0_i32_0 = arith.constant 0 : i32
    %c0_i32_1 = arith.constant 0 : i32
    return %c0_i32, %c0_i32_0 : i32, i32
  }
  func.func @transform_2(%arg0: i32) -> (i32, i32) {
    %c0_i32 = arith.constant 0 : i32
    %c0_i32_0 = arith.constant 0 : i32
    %c0_i32_1 = arith.constant 0 : i32
    return %c0_i32, %c0_i32_0 : i32, i32
  }
  func.func @transform_3(%arg0: i32) -> (i32, i32) {
    %c0_i32 = arith.constant 0 : i32
    %c0_i32_0 = arith.constant 0 : i32
    return %c0_i32, %arg0 : i32, i32
  }
}

</mosaic_0001>

<bundles_post_ra>
// kernel: tpu_custom_call.1
= control target key start
LH: loop header
LB: loop body
LE: loop exit
PB: predicated region body
PF: predicated region fallthrough
CT: control target
= control target key end

     0   :  { %8 = vsyncpa [#allocation3], 0  ;;  %s867_s0 = inlined_call_operand.hbm [shape: f32[2,4096], index: 0, kind: input, shape index: {}]   ;;  %s868_s1 = inlined_call_operand.vmem [shape: f32[4,2], index: 1, kind: input, shape index: {}]   ;;  %s869_s2 = inlined_call_operand.vmem [shape: f32[4,1], index: 2, kind: input, shape index: {}]   ;;  %s870_s3 = inlined_call_operand.hbm [shape: f32[4,4096], index: 3, kind: output, shape index: {}]  }
   0x1   :  { %10 = vsyncpa [#allocation3 + $0x1], 0 }
   0x2   :  { %11 = vsyncpa [#allocation4], 0 }
   0x3   :  { %13 = vsyncpa [#allocation4 + $0x1], 0  ;;  %s715_s12 = smov 0   ;;  %s717_s13 = smov 0  }
   0x4   :  { %s719_s14 = smov 0   ;;  %s721_s15 = smov 0  }
   0x5 LB: > { %s736_s16 = sadd.s32 4294967295, %s691_s15   ;;  %s527_s17 = sadd.s32 4294967294, %s691_s15   ;;  %s691_s15 = sphi %s721_s15, %s880_s15   ;;  %s687_s14 = sphi %s719_s14, %s879_s14   ;;  %s683_s13 = sphi %s717_s13, %s878_s13   ;;  %s679_s12 = sphi %s715_s12, %s877_s12  }
   0x6   : > { %s740_s18 = sadd.s32 1, %s691_s15   ;;  %s26_s19 = sadd.s32 1, %s687_s14 }
   0x7   : > { %s23_s20 = ssub.s32 %s691_s15, %s740_s18  ;;  %p33_p0 = scmp.ne.s32.totalorder %s687_s14, %s683_s13 }
   0x8   : > { %p24_p1 = scmp.eq.s32.totalorder %s23_s20, 0  ;;  %p34_p2 = scmp.eq.s32.totalorder %s691_s15, 0 }
   0x9   : > { %p39_p3 = scmp.ne.s32.totalorder %s683_s13, %s679_s12  ;;  %p40_p4 = scmp.eq.s32.totalorder %s736_s16, 0 }
   0xa   : > { %s752_s21 = scalar_select %p24_p1, %s687_s14, %s26_s19  }
   0xb   : > { %p754_p5 = por %p34_p2, %p33_p0  ;;  %p758_p6 = por %p40_p4, %p39_p3 }
   0xc   : > { %p105_p7 = scmp.eq.s32.totalorder %s736_s16, 1  ;;  %p111_p8 = scmp.eq.s32.totalorder %s527_s17, 1 }
   0xd   : > { %p555_p10 = scmp.lt.s32.totalorder %s691_s15, 2  ;;  %s137_s26 = sand.u32 1, %s687_s14  }
   0xe   : > { %p765_p11 = por %p105_p7, %p33_p0  ;;  %p769_p12 = por %p111_p8, %p39_p3 }
   0xf   : > { %s541_s27 = sshll.u32 %s691_s15, 5  ;;  %s530_s28 = sshll.u32 %s137_s26, 5 }
  0x10   : > { %s146_s4 = scalar_lea.hbm %s867_s0, %s541_s27  ;;  %s141_s6 = scalar_lea.vmem [#allocation2], %s530_s28 }
  0x11   : > { %s148_s5 = sshll.u32 %s146_s4, 4  ;;  %s150_s7 = sshll.u32 %s141_s6, 4  ;;  %s149_s5 = int_to_ptr.hbm [resolvable:$true] %s148_s5  ;;  %s151_s7 = int_to_ptr.vmem [resolvable:$true] %s150_s7 }
  0x12   : > { %p780_p13 = pnand %p555_p10, %p754_p5  ;;  %p533_p0 = scmp.ge.s32.totalorder %s691_s15, 1 }
  0x13   : > { %p155_p1 = scmp.lt.s32.totalorder %s691_s15, 3  ;;  %s138_s9 = scalar_lea.sflag [#allocation3], %s137_s26 }
  0x14   : > { %s595_s10 = sshra.s32 %s149_s5, 4  ;;  %p599_p3 = pneg %p780_p13  ;;  %s596_s10 = int_to_ptr.hbm [resolvable:$true] %s595_s10 }
  0x15   : > { %s597_s11 = scalar_lea.hbm %s596_s10, 32  ;;  %s602_s20 = scalar_lea.hbm %s867_s0, 64 }
  0x16   : > { %p598_p2 = scmp.ne.s32.totalorder %s596_s10, %s597_s11  ;;  %p603_p5 = scmp.lt.s32.totalorder %s596_s10, %s867_s0 }
  0x17   : > { %p604_p8 = scmp.lt.s32.totalorder %s602_s20, %s597_s11 }
  0x18   : > { %p600_p4 = pnand %p599_p3, %p598_p2 }
  0x19   : > { %p605_p10 = por %p604_p8, %p603_p5 }
  0x1a   : > { %p601_p7 = pneg %p600_p4 }
  0x1c   : > { %p606_p9 = pnand %p605_p10, %p601_p7 }
  0x1e   : > { %609 = shalt.err (!%p606_p9)
}
  0x1f   : > { %550 = dma.hbm_to_vmem [thread:$0]  (!%p780_p13), %s149_s5, 512, %s151_s7, %s138_s9  }
  0x20   : > { %p156_p2 = pnand %p533_p0, %p155_p1 }
  0x21   : > { %s801_s26 = sand.u32 (!%p156_p2), 1, %s683_s13  }
  0x22   : > { %159 = sbr.rel (%p156_p2) target bundleno = 194 (0xc2), region = 32  ;;  %s534_s28 = sshll.u32 (!%p156_p2), %s801_s26, 5 }
  0x23   : > { %s162_s29 = scalar_lea.sflag (!%p156_p2), [#allocation3], %s801_s26  ;;  %s165_s30 = scalar_lea.vmem (!%p156_p2), [#allocation2], %s534_s28 }
  0x27   : > { %670 = dma.done.wait (%p758_p6), %s162_s29, 512  }
  0x28   : > { %672 = vsyncadd (%p758_p6), %s162_s29, 4294966784  ;;  %v693_v0 = vmov 0   ;;  %v195_v1 = vld [vmem:[%s868_s1] sm:$0xf]  ;;  %v694_v3 = vmov 1   ;;  %v192_v5 = vld [vmem:[%s165_s30 + $0x8] sm:$0xff] }
  0x29   : > { %591 = vset.pattern.permute.xlu0 %v693_v0  ;;  %593 = vset.pattern.permute.xlu1 %v693_v0  ;;  %v196_v2 = vld [vmem:[%s869_s2] sm:$0xf]  ;;  %v193_v6 = vld [vmem:[%s165_s30 + $0x10] sm:$0xff]  ;;  %v815_v7 = vld [vmem:[%s165_s30 + $0x18] sm:$0xff]  ;;  %v210_v12 = vperm.slane %v192_v5, 0  ;;  %v211_v13 = vperm.slane %v192_v5, 2 }
  0x2a   : > { %199 = vperm.xlu0 %591, %v195_v1   ;;  %356 = vperm.xlu1 %593, %v196_v2   ;;  %v191_v4 = vld [vmem:[%s165_s30] sm:$0xff]  ;;  %v212_v14 = vperm.slane %v192_v5, 4  ;;  %v213_v15 = vperm.slane %v192_v5, 6  ;;  %v214_v16 = vperm.slane %v193_v6, 0  ;;  %v215_v17 = vperm.slane %v193_v6, 2  ;;  %s535_s23 = sshll.u32 %s801_s26, 6 }
  0x2b   : > { %v206_v8 = vperm.slane %v191_v4, 0  ;;  %v207_v9 = vperm.slane %v191_v4, 2  ;;  %v208_v10 = vperm.slane %v191_v4, 4  ;;  %v209_v11 = vperm.slane %v191_v4, 6  ;;  %s542_s8 = sshll.u32 %s736_s16, 6  ;;  %s188_s16 = scalar_lea.vmem [#allocation5], %s535_s23 }
  0x2c   : > { %v216_v18 = vperm.slane %v193_v6, 4  ;;  %v217_v19 = vperm.slane %v193_v6, 6  ;;  %v218_v20 = vperm.slane %v815_v7, 0  ;;  %v219_v21 = vperm.slane %v815_v7, 2  ;;  %s452_s11 = scalar_lea.hbm %s870_s3, %s542_s8  ;;  %s454_s17 = sshll.u32 %s188_s16, 4  ;;  %s455_s17 = int_to_ptr.vmem [resolvable:$true] %s454_s17 }
  0x2d   : > { %v220_v22 = vperm.slane %v815_v7, 4  ;;  %v221_v23 = vperm.slane %v815_v7, 6  ;;  %v238_v24 = vperm.slane %v206_v8, 0  ;;  %v239_v25 = vperm.slane %v207_v9, 0  ;;  %s456_s19 = sshll.u32 %s452_s11, 4  ;;  %s441_s20 = scalar_lea.sflag [#allocation4], %s801_s26  ;;  %s457_s19 = int_to_ptr.hbm [resolvable:$true] %s456_s19 }
  0x2e   : > { %v240_v26 = vperm.slane %v208_v10, 0  ;;  %v241_v27 = vperm.slane %v209_v11, 0  ;;  %v242_v28 = vperm.slane %v210_v12, 0  ;;  %v243_v29 = vperm.slane %v211_v13, 0  ;;  %s639_s22 = sshra.s32 %s457_s19, 4  ;;  %s645_s30 = scalar_lea.hbm %s870_s3, 128  ;;  %s640_s22 = int_to_ptr.hbm [resolvable:$true] %s639_s22 }
  0x2f   : > { %v244_v30 = vperm.slane %v212_v14, 0  ;;  %v245_v31 = vperm.slane %v213_v15, 0  ;;  %v246_v32 = vperm.slane %v214_v16, 0  ;;  %v247_v33 = vperm.slane %v215_v17, 0  ;;  %s641_s27 = scalar_lea.hbm %s640_s22, 64  ;;  %p646_p0 = scmp.lt.s32.totalorder %s640_s22, %s870_s3 }
  0x30   : > { %v248_v34 = vperm.slane %v216_v18, 0  ;;  %v249_v35 = vperm.slane %v217_v19, 0  ;;  %v250_v36 = vperm.slane %v218_v20, 0  ;;  %v251_v37 = vperm.slane %v219_v21, 0  ;;  %p642_p6 = scmp.ne.s32.totalorder %s640_s22, %s641_s27  ;;  %p647_p1 = scmp.lt.s32.totalorder %s645_s30, %s641_s27 }
  0x31   : > { %v252_v38 = vperm.slane %v220_v22, 0  ;;  %v253_v39 = vperm.slane %v221_v23, 0  ;;  %v274_v40 = vperm.slane %v191_v4, 1  ;;  %v275_v41 = vperm.slane %v191_v4, 3 }
  0x32   : > { %592 = vset.pattern.permute.xlu0 %v694_v3  ;;  %v276_v42 = vperm.slane %v191_v4, 5  ;;  %v277_v44 = vperm.slane %v191_v4, 7  ;;  %v278_v45 = vperm.slane %v192_v5, 1  ;;  %v279_v46 = vperm.slane %v192_v5, 3  ;;  %p643_p9 = pnand %p642_p6, %p765_p11  ;;  %p648_p3 = por %p647_p1, %p646_p0 }
  0x33   : > { %271 = vperm.xlu0 %592, %v195_v1   ;;  %v280_v47 = vperm.slane %v192_v5, 5  ;;  %v281_v48 = vperm.slane %v192_v5, 7  ;;  %v282_v49 = vperm.slane %v193_v6, 1  ;;  %v283_v50 = vperm.slane %v193_v6, 3 }
  0x34   : > { %v284_v51 = vperm.slane %v193_v6, 5  ;;  %v285_v52 = vperm.slane %v193_v6, 7  ;;  %v286_v53 = vperm.slane %v815_v7, 1  ;;  %v287_v54 = vperm.slane %v815_v7, 3  ;;  %p644_p13 = pneg %p643_p9 }
  0x35   : > { %v288_v55 = vperm.slane %v815_v7, 5  ;;  %v289_v56 = vperm.slane %v815_v7, 7  ;;  %v306_v57 = vperm.slane %v274_v40, 1  ;;  %v307_v58 = vperm.slane %v275_v41, 1 }
  0x36   : > { %v308_v59 = vperm.slane %v276_v42, 1  ;;  %v309_v60 = vperm.slane %v277_v44, 1  ;;  %v310_v61 = vperm.slane %v278_v45, 1  ;;  %v311_v62 = vperm.slane %v279_v46, 1  ;;  %p649_p4 = pnand %p648_p3, %p644_p13 }
  0x37   : > { %v312_v63 = vperm.slane %v280_v47, 1  ;;  %v314_v1 = vperm.slane %v282_v49, 1  ;;  %v315_v2 = vperm.slane %v283_v50, 1  ;;  %v316_v3 = vperm.slane %v284_v51, 1 }
  0x38   : > { %v317_v4 = vperm.slane %v285_v52, 1  ;;  %v318_v5 = vperm.slane %v286_v53, 1  ;;  %v319_v6 = vperm.slane %v287_v54, 1  ;;  %v320_v8 = vperm.slane %v288_v55, 1 }
  0x39   : > { %v321_v12 = vperm.slane %v289_v56, 1  ;;  %vm415_vm0 = vcmask 1043456  }
  0x3b   : > { %594 = vset.pattern.permute.xlu0 %v693_v0  ;;  %v313_v0 = vperm.slane %v281_v48, 1 }
  0x9c   : > { %v200_v43 = vpop.permute.xlu0 %199 }
  0x9d   : > { %v254_v9 = vmul.f32 %v238_v24, %v200_v43  ;;  %v255_v10 = vmul.f32 %v239_v25, %v200_v43  ;;  %v256_v11 = vmul.f32 %v240_v26, %v200_v43  ;;  %v257_v7 = vmul.f32 %v241_v27, %v200_v43 }
  0x9e   : > { %v258_v13 = vmul.f32 %v242_v28, %v200_v43  ;;  %v259_v14 = vmul.f32 %v243_v29, %v200_v43  ;;  %v260_v15 = vmul.f32 %v244_v30, %v200_v43  ;;  %v261_v17 = vmul.f32 %v245_v31, %v200_v43 }
  0x9f   : > { %v262_v18 = vmul.f32 %v246_v32, %v200_v43  ;;  %v263_v19 = vmul.f32 %v247_v33, %v200_v43  ;;  %v264_v20 = vmul.f32 %v248_v34, %v200_v43  ;;  %v265_v21 = vmul.f32 %v249_v35, %v200_v43  ;;  %v357_v35 = vpop.permute.xlu1 %356 }
  0xa0   : > { %v266_v22 = vmul.f32 %v250_v36, %v200_v43  ;;  %v267_v41 = vmul.f32 %v251_v37, %v200_v43  ;;  %v268_v42 = vmul.f32 %v252_v38, %v200_v43  ;;  %v269_v25 = vmul.f32 %v253_v39, %v200_v43 }
  0xa5   : > { %v272_v16 = vpop.permute.xlu0 %271 }
  0xa6   : > { %v323_v23 = vmul.f32 %v307_v58, %v272_v16  ;;  %v325_v40 = vmul.f32 %v309_v60, %v272_v16  ;;  %v327_v44 = vmul.f32 %v311_v62, %v272_v16  ;;  %v329_v24 = vmul.f32 %v313_v0, %v272_v16 }
  0xa7   : > { %v322_v26 = vmul.f32 %v306_v57, %v272_v16  ;;  %v331_v45 = vmul.f32 %v315_v2, %v272_v16  ;;  %v333_v27 = vmul.f32 %v317_v4, %v272_v16  ;;  %v324_v28 = vmul.f32 %v308_v59, %v272_v16 }
  0xa8   : > { %v326_v29 = vmul.f32 %v310_v61, %v272_v16  ;;  %v335_v30 = vmul.f32 %v319_v6, %v272_v16  ;;  %v337_v46 = vmul.f32 %v321_v12, %v272_v16  ;;  %v328_v31 = vmul.f32 %v312_v63, %v272_v16 }
  0xa9   : > { %v330_v32 = vmul.f32 %v314_v1, %v272_v16  ;;  %v339_v33 = vadd.f32 %v323_v23, %v255_v10  ;;  %v341_v34 = vadd.f32 %v325_v40, %v257_v7  ;;  %v332_v36 = vmul.f32 %v316_v3, %v272_v16 }
  0xaa   : > { %v334_v47 = vmul.f32 %v318_v5, %v272_v16  ;;  %v343_v48 = vadd.f32 %v327_v44, %v259_v14  ;;  %v345_v37 = vadd.f32 %v329_v24, %v261_v17  ;;  %v336_v38 = vmul.f32 %v320_v8, %v272_v16 }
  0xab   : > { %v338_v49 = vadd.f32 %v322_v26, %v254_v9  ;;  %v347_v50 = vadd.f32 %v331_v45, %v263_v19  ;;  %v349_v39 = vadd.f32 %v333_v27, %v265_v21  ;;  %v340_v43 = vadd.f32 %v324_v28, %v256_v11 }
  0xac   : > { %v342_v51 = vadd.f32 %v326_v29, %v258_v13  ;;  %v351_v52 = vadd.f32 %v335_v30, %v267_v41  ;;  %v353_v53 = vadd.f32 %v337_v46, %v269_v25  ;;  %v344_v54 = vadd.f32 %v328_v31, %v260_v15 }
  0xad   : > { %v346_v55 = vadd.f32 %v330_v32, %v262_v18  ;;  %v360_v56 = vadd.f32 %v357_v35, %v339_v33  ;;  %v362_v57 = vadd.f32 %v357_v35, %v341_v34  ;;  %v348_v58 = vadd.f32 %v332_v36, %v264_v20 }
  0xae   : > { %v350_v59 = vadd.f32 %v334_v47, %v266_v22  ;;  %v364_v60 = vadd.f32 %v357_v35, %v343_v48  ;;  %v366_v61 = vadd.f32 %v357_v35, %v345_v37  ;;  %v352_v62 = vadd.f32 %v336_v38, %v268_v42 }
  0xaf   : > { %v359_v63 = vadd.f32 %v357_v35, %v338_v49  ;;  %v368_v0 = vadd.f32 %v357_v35, %v347_v50  ;;  %v370_v1 = vadd.f32 %v357_v35, %v349_v39  ;;  %v361_v2 = vadd.f32 %v357_v35, %v340_v43 }
  0xb0   : > { %v363_v3 = vadd.f32 %v357_v35, %v342_v51  ;;  %v372_v4 = vadd.f32 %v357_v35, %v351_v52  ;;  %v374_v5 = vadd.f32 %v357_v35, %v353_v53  ;;  %v365_v6 = vadd.f32 %v357_v35, %v344_v54 }
  0xb1   : > { %v367_v8 = vadd.f32 %v357_v35, %v346_v55  ;;  %v376_v9 = vmul.f32 %v360_v56, %v360_v56  ;;  %v378_v10 = vmul.f32 %v362_v57, %v362_v57  ;;  %v369_v11 = vadd.f32 %v357_v35, %v348_v58 }
  0xb2   : > { %v371_v12 = vadd.f32 %v357_v35, %v350_v59  ;;  %v380_v7 = vmul.f32 %v364_v60, %v364_v60  ;;  %v382_v13 = vmul.f32 %v366_v61, %v366_v61  ;;  %v373_v14 = vadd.f32 %v357_v35, %v352_v62 }
  0xb3   : > { %v375_v15 = vmul.f32 %v359_v63, %v359_v63  ;;  %v384_v16 = vmul.f32 %v368_v0, %v368_v0  ;;  %v386_v17 = vmul.f32 %v370_v1, %v370_v1  ;;  %v377_v18 = vmul.f32 %v361_v2, %v361_v2 }
  0xb4   : > { %v379_v19 = vmul.f32 %v363_v3, %v363_v3  ;;  %v388_v20 = vmul.f32 %v372_v4, %v372_v4  ;;  %v390_v21 = vmul.f32 %v374_v5, %v374_v5  ;;  %v407_v22 = vrot.slane %v376_v9, 4 }
  0xb5   : > { %v408_v23 = vrot.slane %v378_v10, 4  ;;  %v409_v40 = vrot.slane %v380_v7, 4  ;;  %v410_v41 = vrot.slane %v382_v13, 4  ;;  %v381_v42 = vmul.f32 %v365_v6, %v365_v6 }
  0xb6   : > { %v383_v44 = vmul.f32 %v367_v8, %v367_v8  ;;  %v411_v24 = vrot.slane %v384_v16, 4  ;;  %v412_v25 = vrot.slane %v386_v17, 4  ;;  %v413_v26 = vrot.slane %v388_v20, 4 }
  0xb7   : > { %v416_v45 = vsel %vm415_vm0, %v375_v15, %v407_v22  ;;  %v417_v27 = vsel %vm415_vm0, %v377_v18, %v408_v23  ;;  %v418_v28 = vsel %vm415_vm0, %v379_v19, %v409_v40  ;;  %v385_v29 = vmul.f32 %v369_v11, %v369_v11 }
  0xb8   : > { %v414_v30 = vrot.slane %v390_v21, 4  ;;  %v419_v46 = vsel %vm415_vm0, %v381_v42, %v410_v41  ;;  %432 = vst [vmem:[%s188_s16] sm:$0xff] %v416_v45  ;;  %v387_v31 = vmul.f32 %v371_v12, %v371_v12  ;;  %v420_v32 = vsel %vm415_vm0, %v383_v44, %v411_v24 }
  0xb9   : > { %433 = vst [vmem:[%s188_s16 + $0x8] sm:$0xff] %v417_v27  ;;  %v389_v33 = vmul.f32 %v373_v14, %v373_v14  ;;  %v421_v34 = vsel %vm415_vm0, %v385_v29, %v412_v25 }
  0xba   : > { %434 = vst [vmem:[%s188_s16 + $0x10] sm:$0xff] %v418_v28  ;;  %v422_v35 = vsel %vm415_vm0, %v387_v31, %v413_v26 }
  0xbb   : > { %435 = vst [vmem:[%s188_s16 + $0x18] sm:$0xff] %v419_v46  ;;  %v423_v36 = vsel %vm415_vm0, %v389_v33, %v414_v30 }
  0xbc   : > { %436 = vst [vmem:[%s188_s16 + $0x20] sm:$0xff] %v420_v32 }
  0xbd   : > { %437 = vst [vmem:[%s188_s16 + $0x28] sm:$0xff] %v421_v34 }
  0xbe   : > { %438 = vst [vmem:[%s188_s16 + $0x30] sm:$0xff] %v422_v35 }
  0xbf   : > { %439 = vst [vmem:[%s188_s16 + $0x38] sm:$0xff] %v423_v36 }
  0xc0   : > { %652 = shalt.err (!%p649_p4)
}
  0xc1   : > { %545 = dma.vmem_to_hbm [thread:$0]  (%p765_p11), %s455_s17, 1024, %s457_s19, %s441_s20  }
  0xc2 PF: > { %s468_s26 = sand.u32 1, %s679_s12   ;;  %p876_p7 = scmp.ge.s32.totalorder %s691_s15, 2 }
  0xc3   : > { %s469_s6 = scalar_lea.sflag [#allocation4], %s468_s26 }
  0xc4   : > { %p552_p5 = pnand %p876_p7, %p769_p12 }
  0xc6   : > { %p553_p8 = pneg %p552_p5 }
  0xc8   : > { %674 = dma.done.wait (%p553_p8), %s469_s6, 1024  }
  0xc9   : > { %676 = vsyncadd (%p553_p8), %s469_s6, 4294966272  ;;  %p16_p10 = scmp.ge.s32.totalorder %s740_s18, 4   ;;  %s877_s12 = smov %s683_s13 }
  0xca   : > { %s878_s13 = smov %s687_s14  ;;  %s879_s14 = smov %s752_s21 }
  0xcb   : > { %s880_s15 = smov %s740_s18  ;;  %18 = sbr.rel (!%p16_p10) target bundleno = 5 (0x5), region = 77 }
  0xd0   :  { %475 = vsyncpa [#allocation3], 1 }
  0xd1   :  { %477 = vsyncpa [#allocation3 + $0x1], 1 }
  0xd2   :  { %478 = vsyncpa [#allocation4], 1 }
  0xd3   :  { %480 = vsyncpa [#allocation4 + $0x1], 1 }

</bundles_post_ra>
